<compile_context>
chip_gen: v7x
topology: tpu7x:2x2x1
jax: 0.10.0
libtpu: 0.0.40
codegen_flags: <defaults>
</compile_context>

<pallas_src>
import math

import jax
import jax.numpy as jnp
from jax import lax
from jax.experimental import pallas as pl
from jax.experimental.pallas import tpu as pltpu

VOCAB = 39     # nn.Embedding(39, 32)
D_MODEL = 32
SEQ = 50       # pe buffer is (1, 50, 32)


def _build_pe(seq: int, d_model: int) -> jnp.ndarray:
    """Exactly reproduce the PyTorch get_pe() table (base 100000.0, per-index parity)."""
    pe = [[0.0] * d_model for _ in range(seq)]
    for i in range(seq):          # pos
        for j in range(d_model):  # dim
            fenmu = 100000.0 ** (j / d_model)
            val = i / fenmu
            pe[i][j] = math.sin(val) if j % 2 == 0 else math.cos(val)
    return jnp.asarray(pe, dtype=jnp.float32)  # (seq, d_model)


def _round_up(x: int, m: int) -> int:
    return (x + m - 1) // m * m


def _pos_embed_kernel(ids_ref, wt_ref, pet_ref, o_ref):
    # ids_ref : (1, N_pad)   int32  -- flattened token ids (one lane-dense row)
    # wt_ref  : (D, V_pad)   f32    -- transposed, zero-padded embedding table
    # pet_ref : (D, N_pad)   f32    -- transposed PE, already tiled over batch
    # o_ref   : (D, N_pad)   f32    -- transposed output (lane-dense stores)
    ids = ids_ref[...]                                        # (1, N_pad)
    V_pad = wt_ref.shape[1]
    N_pad = ids.shape[1]

    # Transposed one-hot: onehot_t[v, n] = (ids[n] == v).  ids broadcast along
    # sublanes, iota along the sublane axis -> clean per-lane compare (VPU only).
    v_iota = lax.broadcasted_iota(jnp.int32, (V_pad, N_pad), 0)
    onehot_t = (ids == v_iota).astype(jnp.float32)            # (V_pad, N_pad)

    # Gather as a single MXU matmul: (D, V_pad) @ (V_pad, N_pad) -> (D, N_pad),
    # then fuse the positional-encoding add.
    emb_t = jnp.dot(wt_ref[...], onehot_t,
                    preferred_element_type=jnp.float32)
    o_ref[...] = emb_t + pet_ref[...]


@jax.jit
def position_embedding(x_tokens: jnp.ndarray,
                       embed_weight: jnp.ndarray,
                       pe: jnp.ndarray) -> jnp.ndarray:
    """x_tokens: (B, S) int32; embed_weight: (V, D) f32; pe: (S, D) f32 -> (B, S, D) f32."""
    B, S = x_tokens.shape
    V, D = embed_weight.shape
    N = B * S
    N_pad = _round_up(N, 128)   # lane-dense token/output axis
    V_pad = _round_up(V, 128)   # lane-dense contraction axis

    # Wrapper-side layout plumbing (tiny one-off XLA ops, all < 100 KB):
    # ids as a single lane-dense row (1, N_pad); pad slots use id 0 (sliced off later).
    ids = jnp.zeros((1, N_pad), jnp.int32).at[0, :N].set(
        x_tokens.reshape(N).astype(jnp.int32))
    # Transposed, zero-padded weight table: (D, V_pad).
    w_t = jnp.zeros((D, V_pad), jnp.float32).at[:, :V].set(embed_weight.T)
    # Positional encoding tiled over batch, transposed & zero-padded: (D, N_pad).
    pe_t = jnp.zeros((D, N_pad), jnp.float32).at[:, :N].set(jnp.tile(pe, (B, 1)).T)

    # Single invocation: no grid, all operands resident in VMEM.
    out_t = pl.pallas_call(
        _pos_embed_kernel,
        out_shape=jax.ShapeDtypeStruct((D, N_pad), jnp.float32),
        in_specs=[pl.BlockSpec(memory_space=pltpu.MemorySpace.VMEM)] * 3,
        out_specs=pl.BlockSpec(memory_space=pltpu.MemorySpace.VMEM),
    )(ids, w_t, pe_t)

    # Transpose back, drop padding, restore (B, S, D).
    return out_t.T[:N].reshape(B, S, D)


if __name__ == "__main__":
    key = jax.random.PRNGKey(0)
    k_w, k_x = jax.random.split(key)

    # Deterministic parameter init: embed.weight ~ Normal(0, 0.1)
    embed_weight = 0.1 * jax.random.normal(k_w, (VOCAB, D_MODEL), dtype=jnp.float32)
    pe = _build_pe(SEQ, D_MODEL)  # (50, 32)

    # Example input: batch of token-id sequences (B, 50), ids in [0, 39)
    B = 2
    x = jax.random.randint(k_x, (B, SEQ), 0, VOCAB, dtype=jnp.int32)

    out = position_embedding(x, embed_weight, pe)
    out = jax.block_until_ready(out)

    # Reference check in plain JAX (embedding lookup + pe broadcast)
    ref = embed_weight[x] + pe[None, :, :]
    assert out.shape == (B, SEQ, D_MODEL)
    assert jnp.allclose(out, ref, atol=1e-5, rtol=1e-5)

    # TODO(synk): out-of-range token ids silently produce a zero embedding here,
    # whereas torch.nn.Embedding would raise; inputs are assumed in-range.
    print("KERNEL_OK")
</pallas_src>

<mosaic_0001>
module attributes {stable_mosaic.version = 11 : i64} {
  func.func @_pos_embed_kernel(%arg0: memref<1x128xi32, #tpu.memory_space<vmem>>, %arg1: memref<32x128xf32, #tpu.memory_space<vmem>>, %arg2: memref<32x128xf32, #tpu.memory_space<vmem>>, %arg3: memref<32x128xf32, #tpu.memory_space<vmem>>) attributes {dimension_semantics = [], scalar_prefetch = 0 : i64, scratch_operands = 0 : i64, tpu.core_type = #tpu.core_type<tc>} {
    %c0 = arith.constant 0 : index
    %c0_0 = arith.constant 0 : index
    %0 = vector.load %arg0[%c0, %c0_0] : memref<1x128xi32, #tpu.memory_space<vmem>>, vector<1x128xi32>
    %1 = tpu.iota {dimensions = array<i32: 0>} : vector<128x128xi32>
    %2 = vector.broadcast %0 : vector<1x128xi32> to vector<128x128xi32>
    %3 = arith.cmpi eq, %2, %1 : vector<128x128xi32>
    %4 = arith.extui %3 : vector<128x128xi1> to vector<128x128xi32>
    %5 = arith.sitofp %4 : vector<128x128xi32> to vector<128x128xf32>
    %c0_1 = arith.constant 0 : index
    %c0_2 = arith.constant 0 : index
    %6 = vector.load %arg1[%c0_1, %c0_2] : memref<32x128xf32, #tpu.memory_space<vmem>>, vector<32x128xf32>
    %cst = arith.constant dense<0.000000e+00> : vector<32x128xf32>
    %7 = tpu.matmul %6, %5, %cst {dimension_numbers = #tpu.dot_dimension_numbers<[1], [0], [0], [1], [0, 0, 1, 1], [], []>} : vector<32x128xf32>, vector<128x128xf32>, vector<32x128xf32> -> vector<32x128xf32>
    %c0_3 = arith.constant 0 : index
    %c0_4 = arith.constant 0 : index
    %8 = vector.load %arg2[%c0_3, %c0_4] : memref<32x128xf32, #tpu.memory_space<vmem>>, vector<32x128xf32>
    %9 = arith.addf %7, %8 : vector<32x128xf32>
    %c0_5 = arith.constant 0 : index
    %c0_6 = arith.constant 0 : index
    %10 = vector.load %arg3[%c0_5, %c0_6] : memref<32x128xf32, #tpu.memory_space<vmem>>, vector<32x128xf32>
    tpu.vector_store %arg3[%c0_5, %c0_6], %9 {strides = array<i32>} : memref<32x128xf32, #tpu.memory_space<vmem>>, vector<32x128xf32>,
    return
  }
}

</mosaic_0001>

<bundles_post_ra>
// kernel: position_embedding.1
= control target key start
LH: loop header
LB: loop body
LE: loop exit
PB: predicated region body
PF: predicated region fallthrough
CT: control target
= control target key end

     0   :  { %v15_v0 = vlaneseq  ;;  %v325_v10 = vmov 1.0|1.0   ;;  %s403_s0 = inlined_call_operand.vmem [shape: s32[1,128], index: 0, kind: input, shape index: {}]   ;;  %s404_s1 = inlined_call_operand.vmem [shape: f32[32,128], index: 1, kind: input, shape index: {}]   ;;  %s405_s2 = inlined_call_operand.vmem [shape: f32[32,128], index: 2, kind: input, shape index: {}]   ;;  %s406_s3 = inlined_call_operand.vmem [shape: f32[32,128], index: 3, kind: output, shape index: {}]  }
   0x1   :  { %v349_v1 = vld [vmem:[%s403_s0] ss:$0 sm:$0xff]  ;;  %v86_v3 = vld [vmem:[%s404_s1 + $0x10] sm:$0xff]  ;;  %v85_v21 = vld [vmem:[%s404_s1 + $0x8] sm:$0xff] }
   0x2   :  { %v84_v2 = vld [vmem:[%s404_s1] sm:$0xff]  ;;  %v16_v4 = vshrl.u32 %v15_v0, 7  ;;  %273 = vmatprep.mubr.f32.mxu1 %v86_v3  ;;  %v87_v22 = vld [vmem:[%s404_s1 + $0x18] sm:$0xff]  ;;  %v89_v23 = vld [vmem:[%s405_s2 + $0x8] sm:$0xff] }
   0x3   :  { %270 = vmatprep.mubr.f32.mxu0 %v84_v2  ;;  %v91_v24 = vld [vmem:[%s405_s2 + $0x18] sm:$0xff]  ;;  %v88_v25 = vld [vmem:[%s405_s2] sm:$0xff]  ;;  %v90_v26 = vld [vmem:[%s405_s2 + $0x10] sm:$0xff] }
   0x4   :  { %v17_v5 = vadd.s32 8, %v16_v4  ;;  %vm36_vm0 = vcmp.eq.s32.totalorder %v349_v1, %v16_v4  ;;  %v18_v6 = vadd.s32 16, %v16_v4  ;;  %v19_v7 = vadd.s32 24, %v16_v4 }
   0x5   :  { %v20_v8 = vadd.s32 32, %v16_v4  ;;  %v21_v9 = vadd.s32 40, %v16_v4  ;;  %v22_v11 = vadd.s32 48, %v16_v4  ;;  %v23_v12 = vadd.s32 56, %v16_v4 }
   0x6   :  { %vm37_vm1 = vcmp.eq.s32.totalorder %v349_v1, %v17_v5  ;;  %vm38_vm2 = vcmp.eq.s32.totalorder %v349_v1, %v18_v6  ;;  %vm39_vm3 = vcmp.eq.s32.totalorder %v349_v1, %v19_v7  ;;  %v24_v13 = vadd.s32 64, %v16_v4 }
   0x7   :  { %vm276_vm4 = vmpackc.low %vm37_vm1, %vm36_vm0  ;;  %vm40_vm6 = vcmp.eq.s32.totalorder %v349_v1, %v20_v8  ;;  %vm41_vm7 = vcmp.eq.s32.totalorder %v349_v1, %v21_v9  ;;  %vm42_vm9 = vcmp.eq.s32.totalorder %v349_v1, %v22_v11  ;;  %vm43_vm10 = vcmp.eq.s32.totalorder %v349_v1, %v23_v12 }
   0x8   :  { %277 = vmatprep.subr.msk.bf16.mxu0 %vm276_vm4, %v325_v10  ;;  %308 = vmatprep.subr.msk.bf16.mxu1 %vm276_vm4, %v325_v10  ;;  %vm280_vm5 = vmpackc.low %vm39_vm3, %vm38_vm2  ;;  %v25_v14 = vadd.s32 72, %v16_v4  ;;  %vm44_vm12 = vcmp.eq.s32.totalorder %v349_v1, %v24_v13  ;;  %v26_v15 = vadd.s32 80, %v16_v4  ;;  %v27_v16 = vadd.s32 88, %v16_v4 }
   0x9   :  { %279 = vmatpush3.bf16.msk.msra.mxu0 %vm276_vm4, %v325_v10  ;;  %316 = vmatpush3.bf16.msk.msra.mxu1 %vm276_vm4, %v325_v10  ;;  %vm284_vm8 = vmpackc.low %vm41_vm7, %vm40_vm6  ;;  %v28_v17 = vadd.s32 96, %v16_v4  ;;  %v29_v18 = vadd.s32 104, %v16_v4  ;;  %v30_v19 = vadd.s32 112, %v16_v4  ;;  %v31_v20 = vadd.s32 120, %v16_v4 }
   0xa   :  { %281 = vmatprep.subr.msk.bf16.mxu0 %vm280_vm5, %v325_v10  ;;  %309 = vmatprep.subr.msk.bf16.mxu1 %vm280_vm5, %v325_v10  ;;  %vm288_vm11 = vmpackc.low %vm43_vm10, %vm42_vm9  ;;  %vm45_vm13 = vcmp.eq.s32.totalorder %v349_v1, %v25_v14  ;;  %vm46_vm15 = vcmp.eq.s32.totalorder %v349_v1, %v26_v15  ;;  %vm47_vm0 = vcmp.eq.s32.totalorder %v349_v1, %v27_v16 }
   0xb   :  { %vm292_vm14 = vmpackc.low %vm45_vm13, %vm44_vm12  ;;  %vm48_vm2 = vcmp.eq.s32.totalorder %v349_v1, %v28_v17  ;;  %vm49_vm3 = vcmp.eq.s32.totalorder %v349_v1, %v29_v18  ;;  %vm51_vm6 = vcmp.eq.s32.totalorder %v349_v1, %v31_v20 }
   0xc   :  { %vm296_vm1 = vmpackc.low %vm47_vm0, %vm46_vm15 }
   0xd   :  { %283 = vmatpush3.bf16.msk.msra.mxu0 %vm280_vm5, %v325_v10  ;;  %317 = vmatpush3.bf16.msk.msra.mxu1 %vm280_vm5, %v325_v10  ;;  %vm300_vm4 = vmpackc.low %vm49_vm3, %vm48_vm2  ;;  %vm50_vm5 = vcmp.eq.s32.totalorder %v349_v1, %v30_v19 }
   0xe   :  { %285 = vmatprep.subr.msk.bf16.mxu0 %vm284_vm8, %v325_v10  ;;  %310 = vmatprep.subr.msk.bf16.mxu1 %vm284_vm8, %v325_v10  ;;  %vm304_vm7 = vmpackc.low %vm51_vm6, %vm50_vm5 }
  0x11   :  { %287 = vmatpush3.bf16.msk.msra.mxu0 %vm284_vm8, %v325_v10  ;;  %318 = vmatpush3.bf16.msk.msra.mxu1 %vm284_vm8, %v325_v10 }
  0x12   :  { %289 = vmatprep.subr.msk.bf16.mxu0 %vm288_vm11, %v325_v10  ;;  %311 = vmatprep.subr.msk.bf16.mxu1 %vm288_vm11, %v325_v10 }
  0x15   :  { %291 = vmatpush3.bf16.msk.msra.mxu0 %vm288_vm11, %v325_v10  ;;  %319 = vmatpush3.bf16.msk.msra.mxu1 %vm288_vm11, %v325_v10 }
  0x16   :  { %293 = vmatprep.subr.msk.bf16.mxu0 %vm292_vm14, %v325_v10  ;;  %312 = vmatprep.subr.msk.bf16.mxu1 %vm292_vm14, %v325_v10 }
  0x19   :  { %295 = vmatpush3.bf16.msk.msra.mxu0 %vm292_vm14, %v325_v10  ;;  %320 = vmatpush3.bf16.msk.msra.mxu1 %vm292_vm14, %v325_v10 }
  0x1a   :  { %297 = vmatprep.subr.msk.bf16.mxu0 %vm296_vm1, %v325_v10  ;;  %313 = vmatprep.subr.msk.bf16.mxu1 %vm296_vm1, %v325_v10 }
  0x1d   :  { %299 = vmatpush3.bf16.msk.msra.mxu0 %vm296_vm1, %v325_v10  ;;  %321 = vmatpush3.bf16.msk.msra.mxu1 %vm296_vm1, %v325_v10 }
  0x1e   :  { %301 = vmatprep.subr.msk.bf16.mxu0 %vm300_vm4, %v325_v10  ;;  %314 = vmatprep.subr.msk.bf16.mxu1 %vm300_vm4, %v325_v10 }
  0x21   :  { %303 = vmatpush3.bf16.msk.msra.mxu0 %vm300_vm4, %v325_v10  ;;  %322 = vmatpush3.bf16.msk.msra.mxu1 %vm300_vm4, %v325_v10 }
  0x22   :  { %305 = vmatprep.subr.msk.bf16.mxu0 %vm304_vm7, %v325_v10  ;;  %315 = vmatprep.subr.msk.bf16.mxu1 %vm304_vm7, %v325_v10 }
  0x25   :  { %307 = vmatpush3.bf16.msk.msra.mxu0 %vm304_vm7, %v325_v10  ;;  %323 = vmatpush3.bf16.msk.msra.mxu1 %vm304_vm7, %v325_v10 }
  0x28   :  { %271 = vmatmul.mubr.f32.vlgmr.msra.gmra.mrb[0].mxu0 %v85_v21  ;;  %274 = vmatmul.mubr.f32.vlgmr.msra.gmra.mrb[0].mxu1 %v87_v22 }
  0xfb   :  { %v272_v27 = vpop.f32.mrb[0].mxu0  ;;  %v275_v28 = vpop.f32.mrb[0].mxu1 }
  0xfc   :  { %v164_v29 = vadd.f32 %v272_v27, %v89_v23  ;;  %v174_v30 = vadd.f32 %v275_v28, %v91_v24  ;;  %v158_v31 = vpop.f32.mrb[1].mxu0  ;;  %v168_v32 = vpop.f32.mrb[1].mxu1 }
  0xfd   :  { %v159_v33 = vadd.f32 %v158_v31, %v88_v25  ;;  %v169_v34 = vadd.f32 %v168_v32, %v90_v26 }
  0xfe   :  { %178 = vst [vmem:[%s406_s3 + $0x8] sm:$0xff] %v164_v29  ;;  %180 = vst [vmem:[%s406_s3 + $0x18] sm:$0xff] %v174_v30 }
  0xff   :  { %177 = vst [vmem:[%s406_s3] sm:$0xff] %v159_v33  ;;  %179 = vst [vmem:[%s406_s3 + $0x10] sm:$0xff] %v169_v34 }

</bundles_post_ra>
